<compile_context>
chip_gen: v6e
topology: v6e:2x2x1
jax: 0.10.0
libtpu: 0.0.40
codegen_flags: <defaults>
</compile_context>

<pallas_src>
import functools
import itertools

import jax
import jax.numpy as jnp
import numpy as np
from jax.experimental import pallas as pl
from jax.experimental.pallas import tpu as pltpu

_SUBLANE = 8
_LANE = 128
_MAX_TILE_N = 1024                      # v5e/v6e sweet spot; VMEM budget may shrink it
_VMEM_BUDGET = 40 * 1024 * 1024         # per-TC working-set budget (fits v7x 64 MiB)


def _round_up(x, m):
    return ((x + m - 1) // m) * m


def _cdiv(a, b):
    return (a + b - 1) // b


def _kernel_vmem_bytes(tile, c_pad, m_pad):
    """Per-TC VMEM working set for one grid step."""
    io = (2 * tile * c_pad * 4          # logits f32, double-buffered
          + 2 * tile * 8 * 4            # pred slab f32, double-buffered
          + 2 * tile * m_pad * 4        # out f32, double-buffered
          + c_pad * m_pad * 2           # onehot bf16, single-buffered (invariant)
          + 8 * m_pad * 4)              # target slab f32, single-buffered
    tmp = 8 * tile * max(c_pad, m_pad) * 4   # bound on large compiler temporaries
    return io + tmp


def _select_tile_n(n, c_pad, m_pad):
    """Pick TILE_N minimizing N padding, preferring an even (>=2) grid-step
    count (v7x megacore balance) and larger tiles, within the VMEM budget."""
    n8 = _round_up(max(n, _SUBLANE), _SUBLANE)

    cap = _SUBLANE
    t = _SUBLANE
    while t <= min(_MAX_TILE_N, n8) and _kernel_vmem_bytes(t, c_pad, m_pad) <= _VMEM_BUDGET:
        cap = t
        t += _SUBLANE

    best_key, best_tile = None, _SUBLANE
    for tile in range(_SUBLANE, cap + 1, _SUBLANE):
        steps = _cdiv(n8, tile)
        pad = steps * tile - n8
        score = pad / n8                     # wasted DMA + compute fraction
        if steps == 1:
            score += 0.25                    # single step leaves one v7x TC idle
        elif steps % 2 == 1:
            score += 0.5 / steps             # odd step count -> megacore imbalance
        score += 4e-4 * steps                # ~0.35 us per-grid-step overhead proxy
        key = (score, -tile)
        if best_key is None or key < best_key:
            best_key, best_tile = key, tile

    tile = best_tile
    n_pad = _cdiv(n8, tile) * tile
    return tile, n_pad, _kernel_vmem_bytes(tile, c_pad, m_pad)


def _matcher_cost_kernel(logits_ref, pslab_ref, onehot_ref, tslab_ref, out_ref,
                         *, w_class, w_bbox, w_giou, include_giou_const, eps):
    # ---- classification cost: -w_class * softmax(logits)[:, tgt_ids] --------
    # Padded logits columns hold -1e30 (exp -> 0); padded one-hot rows are 0.
    logits = logits_ref[...]                                   # [T, Cp] f32
    m = jnp.max(logits, axis=-1, keepdims=True)
    e = jnp.exp(logits - m)                                    # [T, Cp]
    sum_e = jnp.sum(e, axis=-1, keepdims=True)                 # [T, 1]
    # Class gather as a native single-pass bf16 MXU matmul (one-hot entries
    # are 0/1 — exact in bf16); f32 accumulation.
    u = jnp.dot(e.astype(jnp.bfloat16), onehot_ref[...],
                preferred_element_type=jnp.float32)            # [T, Mp]
    # Exact reciprocal on the tiny [T,1] denominator; fold -w_class in for free.
    class_term = u * (pl.reciprocal(sum_e) * (-w_class))

    # ---- prediction slab: cols 0..3 cxcywh (pre-scaled by w_bbox when >=0),
    #      cols 4..7 xyxy corners --------------------------------------------
    cx = pslab_ref[:, 0:1]; cy = pslab_ref[:, 1:2]             # [T, 1]
    w = pslab_ref[:, 2:3]; h = pslab_ref[:, 3:4]
    px0 = pslab_ref[:, 4:5]; py0 = pslab_ref[:, 5:6]
    px1 = pslab_ref[:, 6:7]; py1 = pslab_ref[:, 7:8]

    # ---- target slab: rows 0..3 cxcywh (same pre-scale), rows 4..7 xyxy -----
    tcx = tslab_ref[0:1, :]; tcy = tslab_ref[1:2, :]           # [1, Mp]
    tw = tslab_ref[2:3, :]; th = tslab_ref[3:4, :]
    tx0 = tslab_ref[4:5, :]; ty0 = tslab_ref[5:6, :]
    tx1 = tslab_ref[6:7, :]; ty1 = tslab_ref[7:8, :]

    # L1 cdist in cxcywh space (w_bbox folded into coords host-side when >= 0).
    l1 = (jnp.abs(cx - tcx) + jnp.abs(cy - tcy) +
          jnp.abs(w - tw) + jnp.abs(h - th))                   # [T, Mp]
    if w_bbox != 1.0:
        l1 = l1 * w_bbox

    # pairwise GIoU (xyxy):  -w_giou*giou == w_giou*(1 - iou - union/area_c)
    area_p = (px1 - px0) * (py1 - py0)                         # [T, 1]
    area_t = (tx1 - tx0) * (ty1 - ty0)                         # [1, Mp]
    iw = jnp.maximum(jnp.minimum(px1, tx1) - jnp.maximum(px0, tx0), 0.0)
    ih = jnp.maximum(jnp.minimum(py1, ty1) - jnp.maximum(py0, ty0), 0.0)
    inter = iw * ih                                            # [T, Mp]
    union = area_p + area_t - inter + eps                      # eps: no Inf/NaN
    iou = inter * pl.reciprocal(union, approx=True)            # EUP recip
    # Enclosure extents are >= 0 by construction (x1 >= x0, y1 >= y0): no clamps.
    ew = jnp.maximum(px1, tx1) - jnp.minimum(px0, tx0)
    eh = jnp.maximum(py1, ty1) - jnp.minimum(py0, ty0)
    area_c = ew * eh + eps
    giou_term = -w_giou * (iou + union * pl.reciprocal(area_c, approx=True))
    if include_giou_const:
        giou_term = giou_term + w_giou

    out_ref[...] = l1 + class_term + giou_term


def matcher_cost_matrix(pred_logits, pred_boxes, tgt_ids, tgt_boxes,
                        cost_class=1.0, cost_bbox=1.0, cost_giou=1.0,
                        include_giou_const=True, eps=1e-9):
    """Returns the DETR matching cost matrix of shape [bs, num_queries, total_targets]."""
    bs, nq, num_classes = pred_logits.shape
    N = bs * nq
    M = int(tgt_ids.shape[0])

    w_class = float(cost_class)
    w_bbox = float(cost_bbox)
    w_giou = float(cost_giou)

    # Fold w_bbox into the L1 coordinates when the sign allows it.
    if w_bbox >= 0.0:
        l1_scale, w_bbox_k = w_bbox, 1.0
    else:
        l1_scale, w_bbox_k = 1.0, w_bbox

    # ---- padding: lane-dense C, M; row-tiled N ------------------------------
    C_pad = _round_up(num_classes, _LANE)
    M_pad = _round_up(max(M, 1), _LANE)
    TILE_N, N_pad, vmem_need = _select_tile_n(N, C_pad, M_pad)

    # logits: pad with a large negative sentinel so exp(pad - max) == 0.
    logits = pred_logits.reshape(N, num_classes).astype(jnp.float32)
    logits_p = jnp.full((N_pad, C_pad), -1e30, jnp.float32)
    logits_p = logits_p.at[:N, :num_classes].set(logits)

    # predictions: [N_pad, 8] = [cxcywh * l1_scale | xyxy]; pad rows with a
    # benign unit box so no NaNs are ever generated.
    pad_box = jnp.array([0.5, 0.5, 1.0, 1.0], jnp.float32)
    boxes = pred_boxes.reshape(N, 4).astype(jnp.float32)
    boxes_p = jnp.broadcast_to(pad_box, (N_pad, 4))
    boxes_p = boxes_p.at[:N].set(boxes)
    pcx, pcy, pw, ph = (boxes_p[:, 0], boxes_p[:, 1], boxes_p[:, 2], boxes_p[:, 3])
    pxyxy = jnp.stack([pcx - 0.5 * pw, pcy - 0.5 * ph,
                       pcx + 0.5 * pw, pcy + 0.5 * ph], axis=-1)
    pslab = jnp.concatenate([boxes_p * l1_scale, pxyxy], axis=-1)      # [N_pad, 8]

    # targets: [8, M_pad] slab, padded columns are unit boxes; sliced off later.
    tb = tgt_boxes.astype(jnp.float32)
    tb_p = jnp.broadcast_to(pad_box, (M_pad, 4))
    tb_p = tb_p.at[:M].set(tb)
    tcx, tcy, tw, th = (tb_p[:, 0], tb_p[:, 1], tb_p[:, 2], tb_p[:, 3])
    txyxy = jnp.stack([tcx - 0.5 * tw, tcy - 0.5 * th,
                       tcx + 0.5 * tw, tcy + 0.5 * th], axis=-1)
    tslab = jnp.concatenate([tb_p * l1_scale, txyxy], axis=-1).T       # [8, M_pad]

    # one-hot class gather matrix in bf16 (entries 0/1 exact); pads are 0.
    onehot = jax.nn.one_hot(tgt_ids, num_classes, dtype=jnp.bfloat16)  # [M, C]
    onehot_p = jnp.zeros((C_pad, M_pad), jnp.bfloat16)
    onehot_p = onehot_p.at[:num_classes, :M].set(onehot.T)

    kernel = functools.partial(_matcher_cost_kernel,
                               w_class=w_class, w_bbox=w_bbox_k, w_giou=w_giou,
                               include_giou_const=include_giou_const, eps=eps)

    flops = 2 * N_pad * C_pad * M_pad + 30 * N_pad * M_pad + 4 * N_pad * C_pad
    bytes_accessed = (4 * (N_pad * C_pad + N_pad * 8 + 8 * M_pad + N_pad * M_pad)
                      + 2 * C_pad * M_pad)
    # Explicit scoped-VMEM budget: actual working set + headroom, capped well
    # below v7x's 64 MiB physical VMEM per TensorCore.
    vmem_limit = int(min(max(vmem_need + (4 << 20), 16 << 20), 48 << 20))

    out = pl.pallas_call(
        kernel,
        out_shape=jax.ShapeDtypeStruct((N_pad, M_pad), jnp.float32),
        grid=(N_pad // TILE_N,),
        in_specs=[
            pl.BlockSpec((TILE_N, C_pad), lambda i: (i, 0)),           # logits tile
            pl.BlockSpec((TILE_N, 8), lambda i: (i, 0)),               # pred slab tile
            pl.BlockSpec((C_pad, M_pad), lambda i: (0, 0),             # onehot (resident,
                         pipeline_mode=pl.Buffered(1)),                #  single-buffered)
            pl.BlockSpec((8, M_pad), lambda i: (0, 0),                 # target slab
                         pipeline_mode=pl.Buffered(1)),
        ],
        out_specs=pl.BlockSpec((TILE_N, M_pad), lambda i: (i, 0)),
        compiler_params=pltpu.CompilerParams(
            dimension_semantics=("parallel",),
            vmem_limit_bytes=vmem_limit),
        cost_estimate=pl.CostEstimate(flops=flops,
                                      transcendentals=N_pad * C_pad,
                                      bytes_accessed=bytes_accessed),
    )(logits_p, pslab, onehot_p, tslab)

    return out[:N, :M].reshape(bs, nq, M)


def _linear_sum_assignment_small(cost):
    """Brute-force Hungarian for tiny cost matrices [nq, nt] with nt <= nq."""
    nq, nt = cost.shape
    best_rows, best_cost = None, None
    for perm in itertools.permutations(range(nq), nt):
        c = sum(cost[perm[j], j] for j in range(nt))
        if best_cost is None or c < best_cost:
            best_cost, best_rows = c, perm
    rows = np.asarray(best_rows, dtype=np.int64)
    cols = np.arange(nt, dtype=np.int64)
    order = np.argsort(rows)
    return rows[order], cols[order]


def box_hungarian_matcher(pred_logits, pred_boxes, target_labels, target_boxes,
                          cost_class=1.0, cost_bbox=1.0, cost_giou=1.0):
    """Full BoxHungarianMatcher.forward (use_focal_loss=False path)."""
    tgt_ids = jnp.concatenate(target_labels, axis=0)
    tgt_bbox = jnp.concatenate(target_boxes, axis=0)
    C = matcher_cost_matrix(pred_logits, pred_boxes, tgt_ids, tgt_bbox,
                            cost_class, cost_bbox, cost_giou)
    C = np.asarray(jax.block_until_ready(C))
    sizes = [int(b.shape[0]) for b in target_boxes]
    indices = []
    off = 0
    for i, s in enumerate(sizes):
        rows, cols = _linear_sum_assignment_small(C[i, :, off:off + s])
        indices.append((rows, cols))
        off += s
    return indices, C


def _reference_cost(pred_logits, pred_boxes, tgt_ids, tgt_bbox):
    """Pure-numpy reference for the cost matrix."""
    logits = np.asarray(pred_logits, np.float32).reshape(-1, pred_logits.shape[-1])
    boxes = np.asarray(pred_boxes, np.float32).reshape(-1, 4)
    tids = np.asarray(tgt_ids)
    tb = np.asarray(tgt_bbox, np.float32)
    e = np.exp(logits - logits.max(-1, keepdims=True))
    prob = e / e.sum(-1, keepdims=True)
    cost_class = -prob[:, tids]
    cost_bbox = np.abs(boxes[:, None, :] - tb[None, :, :]).sum(-1)

    def to_xyxy(b):
        cx, cy, w, h = b[:, 0], b[:, 1], b[:, 2], b[:, 3]
        return np.stack([cx - w / 2, cy - h / 2, cx + w / 2, cy + h / 2], -1)

    p, t = to_xyxy(boxes), to_xyxy(tb)
    ap = (p[:, 2] - p[:, 0]) * (p[:, 3] - p[:, 1])
    at = (t[:, 2] - t[:, 0]) * (t[:, 3] - t[:, 1])
    lt = np.maximum(p[:, None, :2], t[None, :, :2])
    rb = np.minimum(p[:, None, 2:], t[None, :, 2:])
    wh = np.clip(rb - lt, 0, None)
    inter = wh[..., 0] * wh[..., 1]
    union = ap[:, None] + at[None, :] - inter
    iou = inter / union
    ltc = np.minimum(p[:, None, :2], t[None, :, :2])
    rbc = np.maximum(p[:, None, 2:], t[None, :, 2:])
    whc = np.clip(rbc - ltc, 0, None)
    areac = whc[..., 0] * whc[..., 1]
    giou = iou - (areac - union) / areac
    return cost_bbox + cost_class + (-giou)


if __name__ == "__main__":
    key = jax.random.PRNGKey(0)
    bs, nq, num_classes = 2, 8, 16
    sizes = [3, 2]

    k1, k2, k3, k4, k5, k6 = jax.random.split(key, 6)
    pred_logits = jax.random.normal(k1, (bs, nq, num_classes), jnp.float32)
    p_cxy = jax.random.uniform(k2, (bs, nq, 2), minval=0.3, maxval=0.7)
    p_wh = jax.random.uniform(k3, (bs, nq, 2), minval=0.1, maxval=0.4)
    pred_boxes = jnp.concatenate([p_cxy, p_wh], axis=-1)

    target_labels, target_boxes = [], []
    tk = k4
    for s in sizes:
        tk, ka, kb, kc = jax.random.split(tk, 4)
        target_labels.append(jax.random.randint(ka, (s,), 0, num_classes, jnp.int32))
        t_cxy = jax.random.uniform(kb, (s, 2), minval=0.3, maxval=0.7)
        t_wh = jax.random.uniform(kc, (s, 2), minval=0.1, maxval=0.4)
        target_boxes.append(jnp.concatenate([t_cxy, t_wh], axis=-1))

    indices, C = box_hungarian_matcher(pred_logits, pred_boxes,
                                       target_labels, target_boxes,
                                       cost_class=1.0, cost_bbox=1.0, cost_giou=1.0)

    # sanity-check kernel cost matrix against numpy reference
    # (tolerance covers the bf16 MXU class gather (~2^-9 rel) and EUP approx
    #  reciprocals (~2^-12 rel) vs the exact-f32 reference).
    tgt_ids = jnp.concatenate(target_labels, 0)
    tgt_bbox = jnp.concatenate(target_boxes, 0)
    ref = _reference_cost(pred_logits, pred_boxes, tgt_ids, tgt_bbox).reshape(bs, nq, -1)
    assert np.allclose(C, ref, rtol=1e-2, atol=1e-2), "cost matrix mismatch"
    assert np.isfinite(C).all(), "NaN/inf in cost matrix"
    for (i_idx, j_idx), s in zip(indices, sizes):
        assert len(i_idx) == len(j_idx) == min(nq, s)

    jax.block_until_ready(jnp.asarray(C))
    print("KERNEL_OK")
</pallas_src>

<mosaic_0001>
module attributes {stable_mosaic.version = 11 : i64} {
  func.func @_matcher_cost_kernel(%arg0: i32, %arg1: memref<8x128xf32, #tpu.memory_space<vmem>>, %arg2: memref<8x8xf32, #tpu.memory_space<vmem>>, %arg3: memref<128x128xbf16, #tpu.memory_space<vmem>>, %arg4: memref<8x128xf32, #tpu.memory_space<vmem>>, %arg5: memref<8x128xf32, #tpu.memory_space<vmem>>) attributes {dimension_semantics = [#tpu.dimension_semantics<parallel>], iteration_bounds = array<i64: 2>, scalar_prefetch = 0 : i64, scratch_operands = 0 : i64, tpu.core_type = #tpu.core_type<tc>, window_params = [{transform_indices = @transform_0, window_bounds = array<i64: 8, 128>}, {transform_indices = @transform_1, window_bounds = array<i64: 8, 8>}, {pipeline_mode = #tpu.pipeline_mode<synchronous>, transform_indices = @transform_2, window_bounds = array<i64: 128, 128>}, {pipeline_mode = #tpu.pipeline_mode<synchronous>, transform_indices = @transform_3, window_bounds = array<i64: 8, 128>}, {transform_indices = @transform_4, window_bounds = array<i64: 8, 128>}]} {
    %c0 = arith.constant 0 : index
    %c0_0 = arith.constant 0 : index
    %0 = vector.load %arg1[%c0, %c0_0] : memref<8x128xf32, #tpu.memory_space<vmem>>, vector<8x128xf32>
    %cst = arith.constant dense<0xFF800000> : vector<8xf32>
    %1 = vector.multi_reduction <maximumf>, %0, %cst [1] : vector<8x128xf32> to vector<8xf32>
    %2 = vector.shape_cast %1 : vector<8xf32> to vector<8x1xf32>
    %3 = vector.broadcast %2 : vector<8x1xf32> to vector<8x128xf32>
    %4 = arith.subf %0, %3 : vector<8x128xf32>
    %5 = math.exp %4 : vector<8x128xf32>
    %cst_1 = arith.constant dense<0.000000e+00> : vector<8xf32>
    %6 = vector.multi_reduction <add>, %5, %cst_1 [1] : vector<8x128xf32> to vector<8xf32>
    %7 = vector.shape_cast %6 : vector<8xf32> to vector<8x1xf32>
    %8 = arith.truncf %5 : vector<8x128xf32> to vector<8x128xbf16>
    %c0_2 = arith.constant 0 : index
    %c0_3 = arith.constant 0 : index
    %9 = vector.load %arg3[%c0_2, %c0_3] : memref<128x128xbf16, #tpu.memory_space<vmem>>, vector<128x128xbf16>
    %cst_4 = arith.constant dense<0.000000e+00> : vector<8x128xf32>
    %10 = tpu.matmul %8, %9, %cst_4 {dimension_numbers = #tpu.dot_dimension_numbers<[1], [0], [0], [1], [0, 0, 1, 1], [], []>} : vector<8x128xbf16>, vector<128x128xbf16>, vector<8x128xf32> -> vector<8x128xf32>
    %11 = tpu.reciprocal %7 : vector<8x1xf32> -> vector<8x1xf32>
    %cst_5 = arith.constant -1.000000e+00 : f32
    %12 = vector.broadcast %cst_5 : f32 to vector<8x1xf32>
    %13 = arith.mulf %11, %12 : vector<8x1xf32>
    %14 = vector.broadcast %13 : vector<8x1xf32> to vector<8x128xf32>
    %15 = arith.mulf %10, %14 : vector<8x128xf32>
    %c0_6 = arith.constant 0 : index
    %c0_7 = arith.constant 0 : index
    %16 = vector.load %arg2[%c0_6, %c0_7] : memref<8x8xf32, #tpu.memory_space<vmem>>, vector<8x1xf32>
    %c0_8 = arith.constant 0 : index
    %c1 = arith.constant 1 : index
    %17 = vector.load %arg2[%c0_8, %c1] : memref<8x8xf32, #tpu.memory_space<vmem>>, vector<8x1xf32>
    %c0_9 = arith.constant 0 : index
    %c2 = arith.constant 2 : index
    %18 = vector.load %arg2[%c0_9, %c2] : memref<8x8xf32, #tpu.memory_space<vmem>>, vector<8x1xf32>
    %c0_10 = arith.constant 0 : index
    %c3 = arith.constant 3 : index
    %19 = vector.load %arg2[%c0_10, %c3] : memref<8x8xf32, #tpu.memory_space<vmem>>, vector<8x1xf32>
    %c0_11 = arith.constant 0 : index
    %c4 = arith.constant 4 : index
    %20 = vector.load %arg2[%c0_11, %c4] : memref<8x8xf32, #tpu.memory_space<vmem>>, vector<8x1xf32>
    %c0_12 = arith.constant 0 : index
    %c5 = arith.constant 5 : index
    %21 = vector.load %arg2[%c0_12, %c5] : memref<8x8xf32, #tpu.memory_space<vmem>>, vector<8x1xf32>
    %c0_13 = arith.constant 0 : index
    %c6 = arith.constant 6 : index
    %22 = vector.load %arg2[%c0_13, %c6] : memref<8x8xf32, #tpu.memory_space<vmem>>, vector<8x1xf32>
    %c0_14 = arith.constant 0 : index
    %c7 = arith.constant 7 : index
    %23 = vector.load %arg2[%c0_14, %c7] : memref<8x8xf32, #tpu.memory_space<vmem>>, vector<8x1xf32>
    %c0_15 = arith.constant 0 : index
    %c0_16 = arith.constant 0 : index
    %24 = vector.load %arg4[%c0_15, %c0_16] : memref<8x128xf32, #tpu.memory_space<vmem>>, vector<1x128xf32>
    %c1_17 = arith.constant 1 : index
    %c0_18 = arith.constant 0 : index
    %25 = vector.load %arg4[%c1_17, %c0_18] : memref<8x128xf32, #tpu.memory_space<vmem>>, vector<1x128xf32>
    %c2_19 = arith.constant 2 : index
    %c0_20 = arith.constant 0 : index
    %26 = vector.load %arg4[%c2_19, %c0_20] : memref<8x128xf32, #tpu.memory_space<vmem>>, vector<1x128xf32>
    %c3_21 = arith.constant 3 : index
    %c0_22 = arith.constant 0 : index
    %27 = vector.load %arg4[%c3_21, %c0_22] : memref<8x128xf32, #tpu.memory_space<vmem>>, vector<1x128xf32>
    %c4_23 = arith.constant 4 : index
    %c0_24 = arith.constant 0 : index
    %28 = vector.load %arg4[%c4_23, %c0_24] : memref<8x128xf32, #tpu.memory_space<vmem>>, vector<1x128xf32>
    %c5_25 = arith.constant 5 : index
    %c0_26 = arith.constant 0 : index
    %29 = vector.load %arg4[%c5_25, %c0_26] : memref<8x128xf32, #tpu.memory_space<vmem>>, vector<1x128xf32>
    %c6_27 = arith.constant 6 : index
    %c0_28 = arith.constant 0 : index
    %30 = vector.load %arg4[%c6_27, %c0_28] : memref<8x128xf32, #tpu.memory_space<vmem>>, vector<1x128xf32>
    %c7_29 = arith.constant 7 : index
    %c0_30 = arith.constant 0 : index
    %31 = vector.load %arg4[%c7_29, %c0_30] : memref<8x128xf32, #tpu.memory_space<vmem>>, vector<1x128xf32>
    %32 = vector.broadcast %16 : vector<8x1xf32> to vector<8x128xf32>
    %33 = vector.broadcast %24 : vector<1x128xf32> to vector<8x128xf32>
    %34 = arith.subf %32, %33 : vector<8x128xf32>
    %35 = math.absf %34 : vector<8x128xf32>
    %36 = vector.broadcast %17 : vector<8x1xf32> to vector<8x128xf32>
    %37 = vector.broadcast %25 : vector<1x128xf32> to vector<8x128xf32>
    %38 = arith.subf %36, %37 : vector<8x128xf32>
    %39 = math.absf %38 : vector<8x128xf32>
    %40 = arith.addf %35, %39 : vector<8x128xf32>
    %41 = vector.broadcast %18 : vector<8x1xf32> to vector<8x128xf32>
    %42 = vector.broadcast %26 : vector<1x128xf32> to vector<8x128xf32>
    %43 = arith.subf %41, %42 : vector<8x128xf32>
    %44 = math.absf %43 : vector<8x128xf32>
    %45 = arith.addf %40, %44 : vector<8x128xf32>
    %46 = vector.broadcast %19 : vector<8x1xf32> to vector<8x128xf32>
    %47 = vector.broadcast %27 : vector<1x128xf32> to vector<8x128xf32>
    %48 = arith.subf %46, %47 : vector<8x128xf32>
    %49 = math.absf %48 : vector<8x128xf32>
    %50 = arith.addf %45, %49 : vector<8x128xf32>
    %51 = arith.subf %22, %20 : vector<8x1xf32>
    %52 = arith.subf %23, %21 : vector<8x1xf32>
    %53 = arith.mulf %51, %52 : vector<8x1xf32>
    %54 = arith.subf %30, %28 : vector<1x128xf32>
    %55 = arith.subf %31, %29 : vector<1x128xf32>
    %56 = arith.mulf %54, %55 : vector<1x128xf32>
    %57 = vector.broadcast %22 : vector<8x1xf32> to vector<8x128xf32>
    %58 = vector.broadcast %30 : vector<1x128xf32> to vector<8x128xf32>
    %59 = arith.minimumf %57, %58 : vector<8x128xf32>
    %60 = vector.broadcast %20 : vector<8x1xf32> to vector<8x128xf32>
    %61 = vector.broadcast %28 : vector<1x128xf32> to vector<8x128xf32>
    %62 = arith.maximumf %60, %61 : vector<8x128xf32>
    %63 = arith.subf %59, %62 : vector<8x128xf32>
    %cst_31 = arith.constant 0.000000e+00 : f32
    %64 = vector.broadcast %cst_31 : f32 to vector<8x128xf32>
    %65 = arith.maximumf %63, %64 : vector<8x128xf32>
    %66 = vector.broadcast %23 : vector<8x1xf32> to vector<8x128xf32>
    %67 = vector.broadcast %31 : vector<1x128xf32> to vector<8x128xf32>
    %68 = arith.minimumf %66, %67 : vector<8x128xf32>
    %69 = vector.broadcast %21 : vector<8x1xf32> to vector<8x128xf32>
    %70 = vector.broadcast %29 : vector<1x128xf32> to vector<8x128xf32>
    %71 = arith.maximumf %69, %70 : vector<8x128xf32>
    %72 = arith.subf %68, %71 : vector<8x128xf32>
    %cst_32 = arith.constant 0.000000e+00 : f32
    %73 = vector.broadcast %cst_32 : f32 to vector<8x128xf32>
    %74 = arith.maximumf %72, %73 : vector<8x128xf32>
    %75 = arith.mulf %65, %74 : vector<8x128xf32>
    %76 = vector.broadcast %53 : vector<8x1xf32> to vector<8x128xf32>
    %77 = vector.broadcast %56 : vector<1x128xf32> to vector<8x128xf32>
    %78 = arith.addf %76, %77 : vector<8x128xf32>
    %79 = arith.subf %78, %75 : vector<8x128xf32>
    %cst_33 = arith.constant 9.99999971E-10 : f32
    %80 = vector.broadcast %cst_33 : f32 to vector<8x128xf32>
    %81 = arith.addf %79, %80 : vector<8x128xf32>
    %82 = tpu.reciprocal %81 {approx = true} : vector<8x128xf32> -> vector<8x128xf32>
    %83 = arith.mulf %75, %82 : vector<8x128xf32>
    %84 = vector.broadcast %22 : vector<8x1xf32> to vector<8x128xf32>
    %85 = vector.broadcast %30 : vector<1x128xf32> to vector<8x128xf32>
    %86 = arith.maximumf %84, %85 : vector<8x128xf32>
    %87 = vector.broadcast %20 : vector<8x1xf32> to vector<8x128xf32>
    %88 = vector.broadcast %28 : vector<1x128xf32> to vector<8x128xf32>
    %89 = arith.minimumf %87, %88 : vector<8x128xf32>
    %90 = arith.subf %86, %89 : vector<8x128xf32>
    %91 = vector.broadcast %23 : vector<8x1xf32> to vector<8x128xf32>
    %92 = vector.broadcast %31 : vector<1x128xf32> to vector<8x128xf32>
    %93 = arith.maximumf %91, %92 : vector<8x128xf32>
    %94 = vector.broadcast %21 : vector<8x1xf32> to vector<8x128xf32>
    %95 = vector.broadcast %29 : vector<1x128xf32> to vector<8x128xf32>
    %96 = arith.minimumf %94, %95 : vector<8x128xf32>
    %97 = arith.subf %93, %96 : vector<8x128xf32>
    %98 = arith.mulf %90, %97 : vector<8x128xf32>
    %cst_34 = arith.constant 9.99999971E-10 : f32
    %99 = vector.broadcast %cst_34 : f32 to vector<8x128xf32>
    %100 = arith.addf %98, %99 : vector<8x128xf32>
    %101 = tpu.reciprocal %100 {approx = true} : vector<8x128xf32> -> vector<8x128xf32>
    %102 = arith.mulf %81, %101 : vector<8x128xf32>
    %103 = arith.addf %83, %102 : vector<8x128xf32>
    %cst_35 = arith.constant -1.000000e+00 : f32
    %104 = vector.broadcast %cst_35 : f32 to vector<8x128xf32>
    %105 = arith.mulf %104, %103 : vector<8x128xf32>
    %cst_36 = arith.constant 1.000000e+00 : f32
    %106 = vector.broadcast %cst_36 : f32 to vector<8x128xf32>
    %107 = arith.addf %105, %106 : vector<8x128xf32>
    %108 = arith.addf %50, %15 : vector<8x128xf32>
    %109 = arith.addf %108, %107 : vector<8x128xf32>
    %c0_37 = arith.constant 0 : index
    %c0_38 = arith.constant 0 : index
    %110 = vector.load %arg5[%c0_37, %c0_38] : memref<8x128xf32, #tpu.memory_space<vmem>>, vector<8x128xf32>
    tpu.vector_store %arg5[%c0_37, %c0_38], %109 {strides = array<i32>} : memref<8x128xf32, #tpu.memory_space<vmem>>, vector<8x128xf32>,
    return
  }
  func.func @transform_0(%arg0: i32) -> (i32, i32) {
    %c0_i32 = arith.constant 0 : i32
    %c0_i32_0 = arith.constant 0 : i32
    return %arg0, %c0_i32 : i32, i32
  }
  func.func @transform_1(%arg0: i32) -> (i32, i32) {
    %c0_i32 = arith.constant 0 : i32
    %c0_i32_0 = arith.constant 0 : i32
    return %arg0, %c0_i32 : i32, i32
  }
  func.func @transform_2(%arg0: i32) -> (i32, i32) {
    %c0_i32 = arith.constant 0 : i32
    %c0_i32_0 = arith.constant 0 : i32
    %c0_i32_1 = arith.constant 0 : i32
    return %c0_i32, %c0_i32_0 : i32, i32
  }
  func.func @transform_3(%arg0: i32) -> (i32, i32) {
    %c0_i32 = arith.constant 0 : i32
    %c0_i32_0 = arith.constant 0 : i32
    %c0_i32_1 = arith.constant 0 : i32
    return %c0_i32, %c0_i32_0 : i32, i32
  }
  func.func @transform_4(%arg0: i32) -> (i32, i32) {
    %c0_i32 = arith.constant 0 : i32
    %c0_i32_0 = arith.constant 0 : i32
    return %arg0, %c0_i32 : i32, i32
  }
}

</mosaic_0001>

<bundles_post_ra>
// kernel: tpu_custom_call.1
= control target key start
LH: loop header
LB: loop body
LE: loop exit
PB: predicated region body
PF: predicated region fallthrough
CT: control target
= control target key end

     0   :  { %9 = vsyncpa [#allocation3], 0  ;;  %s987_s0 = inlined_call_operand.vmem [shape: f32[16,128], index: 0, kind: input, shape index: {}]   ;;  %s988_s1 = inlined_call_operand.vmem [shape: f32[16,8], index: 1, kind: input, shape index: {}]   ;;  %s989_s2 = inlined_call_operand.hbm [shape: bf16[128,128], index: 2, kind: input, shape index: {}]   ;;  %s990_s3 = inlined_call_operand.vmem [shape: f32[8,128], index: 3, kind: input, shape index: {}]   ;;  %s991_s4 = inlined_call_operand.hbm [shape: f32[16,128], index: 4, kind: output, shape index: {}]  }
   0x1   :  { %10 = vsyncpa [#allocation4], 0 }
   0x2   :  { %12 = vsyncpa [#allocation4 + $0x1], 0  ;;  %s852_s15 = smov 0   ;;  %s854_s16 = smov 0  }
   0x3   :  { %s856_s17 = smov 0   ;;  %s858_s18 = smov 0  }
   0x4 LB: > { %s873_s19 = sadd.s32 4294967295, %s809_s18   ;;  %s575_s20 = sadd.s32 4294967294, %s809_s18   ;;  %s809_s18 = sphi %s858_s18, %s999_s18   ;;  %s805_s17 = sphi %s856_s17, %s998_s17   ;;  %s801_s16 = sphi %s854_s16, %s997_s16   ;;  %s797_s15 = sphi %s852_s15, %s996_s15  }
   0x5   : > { %s877_s21 = sadd.s32 1, %s809_s18   ;;  %s119_s22 = sadd.s32 1, %s805_s17 }
   0x6   : > { %s116_s23 = ssub.s32 %s809_s18, %s877_s21  ;;  %p129_p0 = scmp.ne.s32.totalorder %s805_s17, %s801_s16 }
   0x7   : > { %p117_p1 = scmp.eq.s32.totalorder %s116_s23, 0  ;;  %p130_p2 = scmp.eq.s32.totalorder %s873_s19, 1 }
   0x8   : > { %p135_p3 = scmp.ne.s32.totalorder %s801_s16, %s797_s15  ;;  %p136_p4 = scmp.eq.s32.totalorder %s575_s20, 1 }
   0x9   : > { %s888_s24 = scalar_select %p117_p1, %s805_s17, %s119_s22  }
   0xa   : > { %p890_p5 = por %p130_p2, %p129_p0  ;;  %p894_p6 = por %p136_p4, %p135_p3 }
   0xb   : > { %p576_p7 = scmp.ge.s32.totalorder %s809_s18, 1  ;;  %p143_p8 = scmp.lt.s32.totalorder %s809_s18, 3 }
   0xc   : > { %s993_s26 = scalar_select %p894_p6, 1, 0 }
   0xd   : > { %p643_p9 = scmp.eq.s32.totalorder %s873_s19, 0  ;;  %p901_p10 = pnand %p576_p7, %p143_p8 }
   0xe   : > { %s811_s28 = smov [#allocation2]  }
   0xf   : > { %s155_s29 = sshll.u32 %s811_s28, 4  ;;  %p635_p11 = pneg %p901_p10  ;;  %s156_s29 = int_to_ptr.vmem [resolvable:$true] %s155_s29 }
  0x10   : > { %s730_s30 = scalar_lea.vmem %s156_s29, 1024  ;;  %p738_p3 = scmp.lt.s32.totalorder %s156_s29, %s156_s29 }
  0x11   : > { %p636_p12 = pnand %p643_p9, %p635_p11  ;;  %p731_p0 = scmp.ne.s32.totalorder %s156_s29, %s730_s30 }
  0x12   : > { %p739_p4 = scmp.lt.s32.totalorder %s730_s30, %s730_s30 }
  0x13   : > { %p721_p13 = pneg %p636_p12 }
  0x14   : > { %p740_p6 = por %p739_p4, %p738_p3 }
  0x15   : > { %p733_p1 = pnand %p731_p0, %p721_p13 }
  0x17   : > { %p734_p2 = pneg %p733_p1 }
  0x19   : > { %p741_p7 = pnand %p740_p6, %p734_p2 }
  0x1b   : > { %744 = shalt.err (!%p741_p7)
}
  0x1c   : > { %s812_s5 = smov 64   ;;  %s813_s6 = smov 4  }
  0x1d   : > { %638 = dma.hbm_to_vmem [thread:$0]  (!%p636_p12), %s989_s2, 1024, %s156_s29, [#allocation3], %s812_s5, %s812_s5, %s813_s6  }
  0x1e   : > { %188 = sbr.rel (%p901_p10) target bundleno = 513 (0x201), region = 36 }
  0x23   : > { %788 = dma.done.wait (%p643_p9), [#allocation3], 1024  }
  0x24   : > { %790 = vsyncadd (%p643_p9), [#allocation3], 4294966272  ;;  %p217_p8 = scmp.lt.s32.totalorder %s873_s19, 1  ;;  %v814_v0 = vmov 0.0   ;;  %v703_v2 = vld [vmem:[#allocation2 + $0x38] sm:$0xff]   ;;  %v704_v3 = vld [vmem:[#allocation2 + $0x30] sm:$0xff]   ;;  %v411_v33 = vlaneseq }
  0x25   : > { %609 = vmatprep.subr.bf16.mxu0 %v814_v0  ;;  %v705_v4 = vld [vmem:[#allocation2 + $0x28] sm:$0xff]   ;;  %v706_v5 = vld [vmem:[#allocation2 + $0x20] sm:$0xff]   ;;  %v707_v6 = vld [vmem:[#allocation2 + $0x18] sm:$0xff]   ;;  %vm815_vm0 = vmmov 0   ;;  %s816_s23 = smov 2   ;;  %v817_v11 = vmov 6  }
  0x26   : > { %s218_s9 = scalar_select %p217_p8, %s873_s19, 1  ;;  %610 = vmatpush3.bf16.msra.mxu0 %v703_v2  ;;  %625 = vmatprep.mubr.msk.bf16.mxu0 %vm815_vm0, %v814_v0  ;;  %v708_v7 = vld [vmem:[#allocation2 + $0x10] sm:$0xff]   ;;  %v709_v9 = vld [vmem:[#allocation2 + $0x8] sm:$0xff]   ;;  %v710_v10 = vld [vmem:[#allocation2] sm:$0xff]   ;;  %v818_v12 = vmov 0   ;;  %v820_v18 = vmov 4  }
  0x27   : > { %611 = vmatprep.subr.bf16.mxu0 %v814_v0  ;;  %693 = vset.pattern.permute.xlu1 %v817_v11  ;;  %s819_s27 = smov 127   ;;  %v821_v21 = vmov 7   ;;  %v822_v22 = vmov 5   ;;  %v823_v23 = vmov 1   ;;  %v824_v24 = vmov 2   ;;  %s597_s29 = sshll.u32 %s873_s19, 7 }
  0x28   : > { %s582_s10 = sshll.u32 %s218_s9, 3  ;;  %698 = vset.pattern.permute.xlu0 %v818_v12  ;;  %v825_v25 = vmov 3   ;;  %v412_v35 = vshrl.u32 %v411_v33, 7  ;;  %v349_v37 = vld [vmem:[%s990_s3 + $0x6] sm:$0x1]  ;;  %s490_s8 = scalar_lea.hbm %s991_s4, %s597_s29 }
  0x29   : > { %s220_s13 = scalar_lea.vmem %s987_s0, %s582_s10  ;;  %s224_s22 = scalar_lea.vmem %s988_s1, %s582_s10  ;;  %v347_v39 = vld [vmem:[%s990_s3 + $0x4] sm:$0x1]  ;;  %v350_v40 = vld [vmem:[%s990_s3 + $0x7] sm:$0x1]  ;;  %v348_v41 = vld [vmem:[%s990_s3 + $0x5] sm:$0x1] }
  0x2a   : > { %v226_v1 = vld [vmem:[%s220_s13] sm:$0xff]  ;;  %612 = vmatpush3.bf16.msra.mxu0 %v704_v3  ;;  %v413_v38 = vsub.s32 0, %v412_v35  ;;  %v404_v47 = vsub.f32 %v349_v37, %v347_v39  ;;  %v405_v48 = vsub.f32 %v350_v40, %v348_v41  ;;  %s826_s11 = smov [#allocation5]  }
  0x2b   : > { %227 = vmax.xlane.f32.xlu0 %v226_v1  ;;  %613 = vmatprep.subr.bf16.mxu0 %v814_v0  ;;  %v342_v8 = vld [vmem:[%s224_s22] sm:$0xff]  ;;  %s749_s12 = sshll.u32 %s826_s11, 4  ;;  %s750_s12 = int_to_ptr.vmem [resolvable:$false] %s749_s12 }
  0x2c   : > { %v414_v42 = vrot.slane %v349_v37, %v413_v38  ;;  %v423_v43 = vrot.slane %v347_v39, %v413_v38  ;;  %v434_v44 = vrot.slane %v350_v40, %v413_v38  ;;  %v443_v45 = vrot.slane %v348_v41, %v413_v38  ;;  %s751_s19 = scalar_lea.vmem %s750_s12, 256 }
  0x2d   : > { %v406_v53 = vmul.f32 %v405_v48, %v404_v47 }
  0x2e   : > { %614 = vmatpush3.bf16.msra.mxu0 %v705_v4 }
  0x2f   : > { %615 = vmatprep.subr.bf16.mxu0 %v814_v0  ;;  %v456_v56 = vrot.slane %v406_v53, %v413_v38 }
  0x32   : > { %616 = vmatpush3.bf16.msra.mxu0 %v706_v5 }
  0x33   : > { %617 = vmatprep.subr.bf16.mxu0 %v814_v0 }
  0x36   : > { %618 = vmatpush3.bf16.msra.mxu0 %v707_v6 }
  0x37   : > { %619 = vmatprep.subr.bf16.mxu0 %v814_v0 }
  0x3a   : > { %620 = vmatpush3.bf16.msra.mxu0 %v708_v7 }
  0x3b   : > { %621 = vmatprep.subr.bf16.mxu0 %v814_v0 }
  0x3e   : > { %622 = vmatpush3.bf16.msra.mxu0 %v709_v9 }
  0x3f   : > { %623 = vmatprep.subr.bf16.mxu0 %v814_v0 }
  0x41   : > { %395 = vrot.lane.b32.xlu0 %v342_v8, %s816_s23 }
  0x42   : > { %624 = vmatpush3.bf16.msra.mxu0 %v710_v10  ;;  %v592_v10 = vld [vmem:[%s990_s3] ss:$0 sm:$0xff] }
  0x45   : > { %353 = vperm.xlu0 %698, %v342_v8  }
  0x49   : > { %699 = vset.pattern.permute.xlu0 %v823_v23 }
  0x4a   : > { %363 = vperm.xlu0 %699, %v342_v8  }
  0x4e   : > { %700 = vset.pattern.permute.xlu0 %v824_v24 }
  0x4f   : > { %374 = vperm.xlu0 %700, %v342_v8  }
  0x53   : > { %701 = vset.pattern.permute.xlu0 %v825_v25 }
  0x54   : > { %385 = vperm.xlu0 %701, %v342_v8  }
  0x58   : > { %702 = vset.pattern.permute.xlu0 %v817_v11 }
  0xb4   : > { %v228_v13 = vpop.xlane.xlu0 %227 }
  0xb5   : > { %v229_v14 = vsub.f32 %v226_v1, %v228_v13 }
  0xb7   : > { %v230_v15 = vmul.f32 1.442695, %v229_v14 }
  0xb8   : > { %v396_v16 = vpop.permute.xlu0 %395 }
  0xb9   : > { %711 = vpow2.f32 %v230_v15  ;;  %v398_v17 = vsub.f32 %v342_v8, %v396_v16  ;;  %v594_v16 = vld [vmem:[%s990_s3 + $0x2] ss:$0 sm:$0xff] }
  0xbb   : > { %400 = vrot.lane.b32.xlu1 %v398_v17, %s819_s27  ;;  %s214_s27 = sand.u32 1, %s801_s16  }
  0xbc   : > { %s581_s28 = sshll.u32 %s214_s27, 3  ;;  %s479_s9 = scalar_lea.sflag [#allocation4], %s214_s27 }
  0xbd   : > { %s216_s30 = scalar_lea.vmem [#allocation5], %s581_s28 }
  0xbe   : > { %s492_s5 = sshll.u32 %s216_s30, 4  ;;  %s493_s5 = int_to_ptr.vmem [resolvable:$true] %s492_s5 }
  0xbf   : > { %408 = vperm.xlu1 %693, %v342_v8   ;;  %s745_s10 = scalar_lea.vmem %s493_s5, 128  ;;  %p752_p11 = scmp.lt.s32.totalorder %s493_s5, %s750_s12 }
  0xc0   : > { %v354_v7 = vpop.permute.xlu0 %353  ;;  %p746_p6 = scmp.ne.s32.totalorder %s493_s5, %s745_s10  ;;  %p753_p12 = scmp.lt.s32.totalorder %s751_s19, %s745_s10 }
  0xc1   : > { %v360_v14 = vsub.f32 %v354_v7, %v592_v10 }
  0xc2   : > { %p747_p9 = pnand %p746_p6, %p890_p5  ;;  %p754_p13 = por %p753_p12, %p752_p11 }
  0xc3   : > { %694 = vset.pattern.permute.xlu1 %v820_v18  ;;  %v361_v18 = vand.u32 2147483647, %v360_v14 }
  0xc4   : > { %417 = vperm.xlu1 %694, %v342_v8   ;;  %p748_p10 = pneg %p747_p9 }
  0xc5   : > { %v364_v9 = vpop.permute.xlu0 %363 }
  0xc6   : > { %v712_v19 = vpop.eup %711  ;;  %p755_p0 = pnand %p754_p13, %p748_p10 }
  0xc7   : > { %v234_v20 = vpack.c.bf16 %v712_v19, %v712_v19 }
  0xc8   : > { %695 = vset.pattern.permute.xlu1 %v821_v21  ;;  %v595_v21 = vld [vmem:[%s990_s3 + $0x3] ss:$0 sm:$0xff] }
  0xc9   : > { %626 = vmatmul.mubr.bf16.vlgmr.msra.gmra.mxu0 %v234_v20  ;;  %428 = vperm.xlu1 %695, %v342_v8  }
  0xca   : > { %v375_v12 = vpop.permute.xlu0 %374 }
  0xcb   : > { %v381_v20 = vsub.f32 %v375_v12, %v594_v16 }
  0xcd   : > { %696 = vset.pattern.permute.xlu1 %v822_v22 }
  0xce   : > { %437 = vperm.xlu1 %696, %v342_v8  }
  0xcf   : > { %v386_v22 = vpop.permute.xlu0 %385 }
  0xd2   : > { %697 = vset.pattern.permute.xlu1 %v817_v11  ;;  %v593_v11 = vld [vmem:[%s990_s3 + $0x1] ss:$0 sm:$0xff] }
  0xd3   : > { %v370_v15 = vsub.f32 %v364_v9, %v593_v11 }
 0x12d   : > { %v401_v26 = vpop.permute.xlu1 %400 }
 0x12e   : > { %v403_v27 = vmul.f32 %v401_v26, %v398_v17 }
 0x130   : > { %450 = vperm.xlu1 %697, %v403_v27   ;;  %v382_v27 = vand.u32 2147483647, %v381_v20 }
 0x13a   : > { %v409_v32 = vpop.permute.xlu1 %408 }
 0x13b   : > { %v415_v49 = vmin.f32 %v409_v32, %v414_v42  ;;  %v462_v60 = vmax.f32 %v409_v32, %v414_v42 }
 0x13f   : > { %v418_v34 = vpop.permute.xlu1 %417 }
 0x140   : > { %v424_v50 = vmax.f32 %v418_v34, %v423_v43  ;;  %v463_v61 = vmin.f32 %v418_v34, %v423_v43 }
 0x142   : > { %v425_v54 = vsub.f32 %v415_v49, %v424_v50  ;;  %v464_v2 = vsub.f32 %v462_v60, %v463_v61 }
 0x144   : > { %v429_v36 = vpop.permute.xlu1 %428  ;;  %v426_v58 = vmax.f32 %v425_v54, 0.0 }
 0x145   : > { %v435_v51 = vmin.f32 %v429_v36, %v434_v44  ;;  %v465_v62 = vmax.f32 %v429_v36, %v434_v44 }
 0x149   : > { %v438_v46 = vpop.permute.xlu1 %437 }
 0x14a   : > { %v444_v52 = vmax.f32 %v438_v46, %v443_v45  ;;  %v466_v63 = vmin.f32 %v438_v46, %v443_v45 }
 0x14c   : > { %v445_v55 = vsub.f32 %v435_v51, %v444_v52  ;;  %v467_v3 = vsub.f32 %v465_v62, %v466_v63 }
 0x14e   : > { %v446_v59 = vmax.f32 %v445_v55, 0.0  ;;  %v468_v5 = vmul.f32 %v467_v3, %v464_v2 }
 0x150   : > { %v447_v1 = vmul.f32 %v446_v59, %v426_v58  ;;  %v469_v8 = vadd.f32 1e-09, %v468_v5 }
 0x154   : > { %232 = vadd.xlane.f32.xlu1 %v712_v19  ;;  %v371_v19 = vand.u32 2147483647, %v370_v15 }
 0x156   : > { %v372_v26 = vadd.f32 %v371_v19, %v361_v18 }
 0x189   : > { %v926_v28 = vpop.f32.mrf.mxu0 }
 0x18b   : > { %v627_v29 = vpop.f32.mrf.mxu0 }
 0x18c   : > { %v392_v29 = vsub.f32 %v386_v22, %v595_v21 }
 0x18d   : > { %v336_v30 = vpop.f32.mrf.mxu0 }
 0x18e   : > { %v393_v32 = vand.u32 2147483647, %v392_v29 }
 0x18f   : > { %v628_v31 = vpop.f32.mrf.mxu0 }
 0x190   : > { %v383_v31 = vadd.f32 %v382_v27, %v372_v26 }
 0x192   : > { %v394_v37 = vadd.f32 %v393_v32, %v383_v31 }
 0x1ab   : > { %v451_v57 = vpop.permute.xlu1 %450 }
 0x1ac   : > { %v457_v0 = vadd.f32 %v456_v56, %v451_v57 }
 0x1ae   : > { %v458_v4 = vsub.f32 %v457_v0, %v447_v1 }
 0x1b0   : > { %v459_v6 = vadd.f32 1e-09, %v458_v4 }
 0x1b2   : > { %713 = vrcp.f32 %v459_v6 }
 0x1b3   : > { %715 = vrcp.f32 %v469_v8 }
 0x1bf   : > { %v714_v17 = vpop.eup %713 }
 0x1c0   : > { %v461_v23 = vmul.f32 %v714_v17, %v447_v1  ;;  %v716_v24 = vpop.eup %715 }
 0x1c1   : > { %v471_v25 = vmul.f32 %v716_v24, %v459_v6 }
 0x1c3   : > { %v472_v30 = vadd.f32 %v471_v25, %v461_v23 }
 0x1c5   : > { %v473_v34 = vmul.f32 -1.0, %v472_v30 }
 0x1c7   : > { %v474_v38 = vadd.f32 1.0, %v473_v34 }
 0x1dd   : > { %v233_v13 = vpop.xlane.xlu1 %232 }
 0x1de   : > { %717 = vrcp.f32 %v233_v13 }
 0x1eb   : > { %v718_v33 = vpop.eup %717 }
 0x1ec   : > { %v340_v35 = vmul.f32 -1.0, %v718_v33 }
 0x1ee   : > { %v341_v36 = vmul.f32 %v340_v35, %v926_v28 }
 0x1f0   : > { %v475_v39 = vadd.f32 %v394_v37, %v341_v36 }
 0x1f2   : > { %v476_v40 = vadd.f32 %v475_v39, %v474_v38 }
 0x1f4   : > { %477 = vst [vmem:[%s216_s30] sm:$0xff] %v476_v40 }
 0x1f5   : > { %758 = shalt.err (!%p755_p0)
}
 0x1f6   : > { %s759_s13 = scalar_lea.hbm %s490_s8, 128  ;;  %s763_s22 = scalar_lea.hbm %s991_s4, 256 }
 0x1f7   : > { %p760_p1 = scmp.ne.s32.totalorder %s490_s8, %s759_s13  ;;  %p764_p4 = scmp.lt.s32.totalorder %s490_s8, %s991_s4 }
 0x1f8   : > { %p765_p7 = scmp.lt.s32.totalorder %s763_s22, %s759_s13 }
 0x1f9   : > { %p761_p2 = pnand %p760_p1, %p890_p5 }
 0x1fa   : > { %p766_p8 = por %p765_p7, %p764_p4 }
 0x1fb   : > { %p762_p3 = pneg %p761_p2 }
 0x1fd   : > { %p767_p6 = pnand %p766_p8, %p762_p3 }
 0x1ff   : > { %770 = shalt.err (!%p767_p6)
}
 0x200   : > { %633 = dma.vmem_to_hbm [thread:$0]  (%p890_p5), %s493_s5, 128, %s490_s8, %s479_s9  }
 0x201 PF: > { %p645_p9 = scmp.ge.s32.totalorder %s809_s18, 2  ;;  %s504_s28 = sand.u32 1, %s797_s15  }
 0x202   : > { %p995_p10 = scmp.ne.s32.totalorder %s993_s26, 0  ;;  %s505_s29 = scalar_lea.sflag [#allocation4], %s504_s28 }
 0x204   : > { %p640_p11 = pnand %p645_p9, %p995_p10 }
 0x206   : > { %p641_p12 = pneg %p640_p11 }
 0x208   : > { %792 = dma.done.wait (%p641_p12), %s505_s29, 128  }
 0x209   : > { %794 = vsyncadd (%p641_p12), %s505_s29, 4294967168  ;;  %p15_p13 = scmp.ge.s32.totalorder %s877_s21, 4   ;;  %s996_s15 = smov %s801_s16 }
 0x20a   : > { %s997_s16 = smov %s805_s17  ;;  %s998_s17 = smov %s888_s24 }
 0x20b   : > { %s999_s18 = smov %s877_s21  ;;  %17 = sbr.rel (!%p15_p13) target bundleno = 4 (0x4), region = 79 }
 0x210   :  { %510 = vsyncpa [#allocation3], 1 }
 0x211   :  { %512 = vsyncpa [#allocation3 + $0x1], 1 }
 0x212   :  { %513 = vsyncpa [#allocation4], 1 }
 0x213   :  { %515 = vsyncpa [#allocation4 + $0x1], 1 }

</bundles_post_ra>
